<compile_context>
chip_gen: v5e
topology: v5e:2x2
jax: 0.10.0
libtpu: 0.0.40
codegen_flags: <defaults>
</compile_context>

<pallas_src>
import functools

import jax
import jax.numpy as jnp
from jax.experimental import pallas as pl
from jax.experimental.pallas import tpu as pltpu


def _round_up(x, m):
    return ((x + m - 1) // m) * m


def _classifier_kernel(x_ref, w_ref, b_ref, o_ref, acc_ref, *, inv_len):
    """Grid: (B_tiles, L_tiles).  L (axis 1 of the grid) is the reduction axis.

    x_ref  : (B_t, L_t, H)   input tile (f32 or bf16; upcast here)
    w_ref  : (H, C_pad)      resident transposed classifier weight
    b_ref  : (1, C_pad)      resident bias
    o_ref  : (B_t, C_pad)    logits tile, written once at finalize
    acc_ref: (B_t, H) f32    running sum over L (VMEM scratch)
    """
    l = pl.program_id(1)

    @pl.when(l == 0)
    def _():
        acc_ref[...] = jnp.zeros_like(acc_ref)

    # Raw sum per L tile (VPU adds only); the single 1/L scale is applied at
    # finalize so no per-step divide sits on the VALU slot.
    acc_ref[...] += jnp.sum(x_ref[...].astype(jnp.float32), axis=1)

    @pl.when(l == pl.num_programs(1) - 1)
    def _():
        pooled = acc_ref[...] * jnp.float32(inv_len)          # mean over true L
        w = w_ref[...]
        if w.dtype == jnp.bfloat16:
            # Native bf16 MXU inputs, f32 accumulation.
            logits = jnp.dot(pooled.astype(jnp.bfloat16), w,
                             preferred_element_type=jnp.float32)
        else:
            logits = jnp.dot(pooled, w.astype(jnp.float32),
                             preferred_element_type=jnp.float32)
        logits = logits + b_ref[...].astype(jnp.float32)      # (1, C_pad) broadcast
        o_ref[...] = logits.astype(o_ref.dtype)


def classifier_forward(x, w_t, b, *, l_tile=None, b_tile=None, use_pallas=None,
                       vmem_budget_bytes=8 * 1024 * 1024):
    """x: (B, L, H) f32/bf16; w_t: (H, C) transposed Linear weight; b: (C,)."""
    B, L, H = x.shape
    Hw, C = w_t.shape
    assert Hw == H

    # Tiny problems are launch/grid-step-overhead bound: let XLA fuse them.
    if use_pallas is None:
        use_pallas = (B * L * H) >= (1 << 20)
    if not use_pallas:
        pooled = jnp.mean(x.astype(jnp.float32), axis=1)
        return pooled @ w_t.astype(jnp.float32) + b.astype(jnp.float32)[None, :]

    x_bytes = jnp.dtype(x.dtype).itemsize

    # ---- tile selection ----------------------------------------------------
    if b_tile is None:
        b_tile = B if B <= 8 else 8            # ==B (full dim) or multiple of 8
    if l_tile is None:
        # Keep 2 * B_t * L_t * H * itemsize (double-buffered x) under budget;
        # conservative enough for v7x's 64 MiB VMEM / v5e's 16 MiB scoped default.
        max_lt = vmem_budget_bytes // (2 * b_tile * H * x_bytes)
        l_tile = max(8, min(1024, (max_lt // 8) * 8, _round_up(L, 8)))
    else:
        l_tile = max(8, _round_up(l_tile, 8))

    B_pad = _round_up(B, b_tile)
    L_pad = _round_up(L, l_tile)
    C_pad = _round_up(max(C, 128), 128)        # lane-dense output store

    if (B_pad, L_pad) != (B, L):
        x = jnp.pad(x, ((0, B_pad - B), (0, L_pad - L), (0, 0)))
    if C_pad != C:
        w_t = jnp.pad(w_t, ((0, 0), (0, C_pad - C)))
        b = jnp.pad(b, ((0, C_pad - C),))
    b2d = b.reshape(1, C_pad)

    n_b = B_pad // b_tile
    n_l = L_pad // l_tile

    kernel = functools.partial(_classifier_kernel, inv_len=1.0 / L)

    flops = 2 * B * H * C + B * L * H
    bytes_accessed = (B_pad * L_pad * H * x_bytes
                      + H * C_pad * jnp.dtype(w_t.dtype).itemsize
                      + C_pad * jnp.dtype(b.dtype).itemsize
                      + B_pad * C_pad * 4)

    # TODO(synk): for H << 128 the sublane reduce runs at H/128 lane occupancy;
    # lane-packing (L_t, H) -> (L_t/k, k*H) with a small finalize reduce would
    # restore full vreg occupancy but is omitted here.
    out = pl.pallas_call(
        kernel,
        out_shape=jax.ShapeDtypeStruct((B_pad, C_pad), jnp.float32),
        grid_spec=pltpu.PrefetchScalarGridSpec(
            num_scalar_prefetch=0,
            grid=(n_b, n_l),
            in_specs=[
                pl.BlockSpec((b_tile, l_tile, H), lambda bi, li: (bi, li, 0)),
                pl.BlockSpec((H, C_pad), lambda bi, li: (0, 0)),   # resident
                pl.BlockSpec((1, C_pad), lambda bi, li: (0, 0)),   # resident
            ],
            out_specs=pl.BlockSpec((b_tile, C_pad), lambda bi, li: (bi, 0)),
            scratch_shapes=[pltpu.VMEM((b_tile, H), jnp.float32)],
        ),
        compiler_params=pltpu.CompilerParams(
            dimension_semantics=("parallel", "arbitrary"),
            vmem_limit_bytes=32 * 1024 * 1024,
        ),
        cost_estimate=pl.CostEstimate(flops=flops, transcendentals=0,
                                      bytes_accessed=bytes_accessed),
    )(x, w_t, b2d)

    return out[:B, :C]


def reference_forward(x, w_t, b):
    pooled = jnp.mean(x.astype(jnp.float32), axis=1)
    return pooled @ w_t.astype(jnp.float32) + b.astype(jnp.float32)[None, :]


if __name__ == "__main__":
    # Hyper-variable stand-ins consistent with the module (small demo shapes).
    B, L, H, C = 2, 8, 32, 4      # batch, seq (L_base), hidden_dim, class_num
    init_std = 0.02               # hyper_vars.init_std

    key = jax.random.PRNGKey(0)
    kx, kw, kb, kx2, kw2, kb2 = jax.random.split(key, 6)

    # ---- test 1: demo shapes, f32, force the Pallas path --------------------
    x = jax.random.normal(kx, (B, L, H), dtype=jnp.float32)
    # nn.Linear(H, C): weight (C, H), bias (C); stored transposed as (H, C).
    w = jax.random.normal(kw, (C, H), dtype=jnp.float32) * init_std
    b = jax.random.normal(kb, (C,), dtype=jnp.float32) * init_std
    w_t = w.T

    out = jax.block_until_ready(classifier_forward(x, w_t, b, use_pallas=True))
    ref = reference_forward(x, w_t, b)
    assert out.shape == (B, C)
    assert jnp.allclose(out, ref, atol=1e-5, rtol=1e-5)

    # ---- test 2: exercise the tiled reduction + bf16 path -------------------
    B2, L2 = 16, 40
    x2 = jax.random.normal(kx2, (B2, L2, H), dtype=jnp.float32).astype(jnp.bfloat16)
    w2 = (jax.random.normal(kw2, (C, H), dtype=jnp.float32) * init_std).astype(jnp.bfloat16)
    b2 = jax.random.normal(kb2, (C,), dtype=jnp.float32) * init_std
    out2 = jax.block_until_ready(
        classifier_forward(x2, w2.T, b2, use_pallas=True, l_tile=8, b_tile=8))
    ref2 = reference_forward(x2, w2.T, b2)
    assert out2.shape == (B2, C)
    assert jnp.allclose(out2, ref2, atol=1e-3, rtol=1e-2)

    # TODO(synk): the 'mean' processing branch (LayerNorm without affine), MAX
    # pooling, and factor_reduce > 1 variants are not exercised by the default
    # construction and are not implemented here.
    print("KERNEL_OK")
</pallas_src>

<mosaic_0001>
module attributes {stable_mosaic.version = 11 : i64} {
  func.func @_classifier_kernel(%arg0: i32, %arg1: i32, %arg2: memref<2x8x32xf32, #tpu.memory_space<vmem>>, %arg3: memref<32x128xf32, #tpu.memory_space<vmem>>, %arg4: memref<1x128xf32, #tpu.memory_space<vmem>>, %arg5: memref<2x128xf32, #tpu.memory_space<vmem>>, %arg6: memref<2x32xf32, #tpu.memory_space<vmem>>) attributes {dimension_semantics = [#tpu.dimension_semantics<parallel>, #tpu.dimension_semantics<arbitrary>], iteration_bounds = array<i64: 1, 1>, scalar_prefetch = 0 : i64, scratch_operands = 1 : i64, tpu.core_type = #tpu.core_type<tc>, window_params = [{transform_indices = @transform_0, window_bounds = array<i64: 2, 8, 32>}, {pipeline_mode = #tpu.pipeline_mode<synchronous>, transform_indices = @transform_1, window_bounds = array<i64: 32, 128>}, {pipeline_mode = #tpu.pipeline_mode<synchronous>, transform_indices = @transform_2, window_bounds = array<i64: 1, 128>}, {transform_indices = @transform_3, window_bounds = array<i64: 2, 128>}]} {
    %c0_i32 = arith.constant 0 : i32
    %0 = arith.cmpi eq, %arg1, %c0_i32 : i32
    %1 = arith.extui %0 : i1 to i32
    %c0_i32_0 = arith.constant 0 : i32
    %2 = arith.cmpi ne, %1, %c0_i32_0 : i32
    scf.if %2 {
      %cst_9 = arith.constant 0.000000e+00 : f32
      %11 = vector.broadcast %cst_9 : f32 to vector<2x32xf32>
      %c0_10 = arith.constant 0 : index
      %c0_11 = arith.constant 0 : index
      %12 = vector.load %arg6[%c0_10, %c0_11] : memref<2x32xf32, #tpu.memory_space<vmem>>, vector<2x32xf32>
      tpu.vector_store %arg6[%c0_10, %c0_11], %11 {strides = array<i32>} : memref<2x32xf32, #tpu.memory_space<vmem>>, vector<2x32xf32>,
    } else {
    }
    %c0 = arith.constant 0 : index
    %c0_1 = arith.constant 0 : index
    %3 = vector.load %arg6[%c0, %c0_1] : memref<2x32xf32, #tpu.memory_space<vmem>>, vector<2x32xf32>
    %c0_2 = arith.constant 0 : index
    %c0_3 = arith.constant 0 : index
    %c0_4 = arith.constant 0 : index
    %4 = vector.load %arg2[%c0_2, %c0_3, %c0_4] : memref<2x8x32xf32, #tpu.memory_space<vmem>>, vector<2x8x32xf32>
    %cst = arith.constant dense<0.000000e+00> : vector<2x32xf32>
    %5 = vector.multi_reduction <add>, %4, %cst [1] : vector<2x8x32xf32> to vector<2x32xf32>
    %6 = arith.addf %3, %5 : vector<2x32xf32>
    %c0_5 = arith.constant 0 : index
    %c0_6 = arith.constant 0 : index
    %7 = vector.load %arg6[%c0_5, %c0_6] : memref<2x32xf32, #tpu.memory_space<vmem>>, vector<2x32xf32>
    tpu.vector_store %arg6[%c0_5, %c0_6], %6 {strides = array<i32>} : memref<2x32xf32, #tpu.memory_space<vmem>>, vector<2x32xf32>,
    %c0_i32_7 = arith.constant 0 : i32
    %8 = arith.cmpi eq, %arg1, %c0_i32_7 : i32
    %9 = arith.extui %8 : i1 to i32
    %c0_i32_8 = arith.constant 0 : i32
    %10 = arith.cmpi ne, %9, %c0_i32_8 : i32
    scf.if %10 {
      %c0_9 = arith.constant 0 : index
      %c0_10 = arith.constant 0 : index
      %11 = vector.load %arg6[%c0_9, %c0_10] : memref<2x32xf32, #tpu.memory_space<vmem>>, vector<2x32xf32>
      %cst_11 = arith.constant 1.250000e-01 : f32
      %12 = vector.broadcast %cst_11 : f32 to vector<2x32xf32>
      %13 = arith.mulf %11, %12 : vector<2x32xf32>
      %c0_12 = arith.constant 0 : index
      %c0_13 = arith.constant 0 : index
      %14 = vector.load %arg3[%c0_12, %c0_13] : memref<32x128xf32, #tpu.memory_space<vmem>>, vector<32x128xf32>
      %cst_14 = arith.constant dense<0.000000e+00> : vector<2x128xf32>
      %15 = tpu.matmul %13, %14, %cst_14 {dimension_numbers = #tpu.dot_dimension_numbers<[1], [0], [0], [1], [0, 0, 1, 1], [], []>} : vector<2x32xf32>, vector<32x128xf32>, vector<2x128xf32> -> vector<2x128xf32>
      %c0_15 = arith.constant 0 : index
      %c0_16 = arith.constant 0 : index
      %16 = vector.load %arg4[%c0_15, %c0_16] : memref<1x128xf32, #tpu.memory_space<vmem>>, vector<1x128xf32>
      %17 = vector.broadcast %16 : vector<1x128xf32> to vector<2x128xf32>
      %18 = arith.addf %15, %17 : vector<2x128xf32>
      %c0_17 = arith.constant 0 : index
      %c0_18 = arith.constant 0 : index
      %19 = vector.load %arg5[%c0_17, %c0_18] : memref<2x128xf32, #tpu.memory_space<vmem>>, vector<2x128xf32>
      tpu.vector_store %arg5[%c0_17, %c0_18], %18 {strides = array<i32>} : memref<2x128xf32, #tpu.memory_space<vmem>>, vector<2x128xf32>,
    } else {
    }
    return
  }
  func.func @transform_0(%arg0: i32, %arg1: i32) -> (i32, i32, i32) {
    %c0_i32 = arith.constant 0 : i32
    %c0_i32_0 = arith.constant 0 : i32
    return %arg0, %arg1, %c0_i32 : i32, i32, i32
  }
  func.func @transform_1(%arg0: i32, %arg1: i32) -> (i32, i32) {
    %c0_i32 = arith.constant 0 : i32
    %c0_i32_0 = arith.constant 0 : i32
    %c0_i32_1 = arith.constant 0 : i32
    return %c0_i32, %c0_i32_0 : i32, i32
  }
  func.func @transform_2(%arg0: i32, %arg1: i32) -> (i32, i32) {
    %c0_i32 = arith.constant 0 : i32
    %c0_i32_0 = arith.constant 0 : i32
    %c0_i32_1 = arith.constant 0 : i32
    return %c0_i32, %c0_i32_0 : i32, i32
  }
  func.func @transform_3(%arg0: i32, %arg1: i32) -> (i32, i32) {
    %c0_i32 = arith.constant 0 : i32
    %c0_i32_0 = arith.constant 0 : i32
    return %arg0, %c0_i32 : i32, i32
  }
}

</mosaic_0001>

<bundles_post_ra>
// kernel: tpu_custom_call.1
= control target key start
LH: loop header
LB: loop body
LE: loop exit
PB: predicated region body
PF: predicated region fallthrough
CT: control target
= control target key end

     0   :  { %8 = vsyncpa [#allocation4], 0  ;;  %s263_s0 = inlined_call_operand.hbm [shape: f32[2,8,32], index: 0, kind: input, shape index: {}]   ;;  %s264_s1 = inlined_call_operand.hbm [shape: f32[32,128], index: 1, kind: input, shape index: {}]   ;;  %s265_s2 = inlined_call_operand.vmem [shape: f32[1,128], index: 2, kind: input, shape index: {}]   ;;  %s266_s3 = inlined_call_operand.hbm [shape: f32[2,128], index: 3, kind: output, shape index: {}]  }
   0x1   :  { %9 = vsyncpa [#allocation7], 0 }
   0x2   :  { %10 = vsyncpa [#allocation5], 0  ;;  %s15_s14 = sshll.u32 %s263_s0, 4  ;;  %s220_s15 = smov [#allocation3]   ;;  %s16_s14 = int_to_ptr.hbm [resolvable:$true] %s15_s14 }
   0x3   :  { %s17_s16 = sshll.u32 %s220_s15, 4  ;;  %s28_s19 = sshll.u32 %s264_s1, 4  ;;  %s18_s16 = int_to_ptr.vmem [resolvable:$true] %s17_s16  ;;  %s29_s19 = int_to_ptr.hbm [resolvable:$true] %s28_s19 }
   0x4   :  { %s221_s20 = smov 128   ;;  %s222_s21 = smov 8  }
   0x5   :  { %23 = dma.hbm_to_vmem [thread:$0]  %s16_s14, 256, %s18_s16, [#allocation4], %s221_s20, %s221_s20, %s222_s21  }
   0x6   :  { %s223_s22 = smov [#allocation6]  }
   0x7   :  { %s30_s23 = sshll.u32 %s223_s22, 4  ;;  %s31_s23 = int_to_ptr.vmem [resolvable:$true] %s30_s23 }
   0x8   :  { %36 = dma.hbm_to_vmem [thread:$0]  %s29_s19, 512, %s31_s23, [#allocation7], %s221_s20, %s221_s20, %s222_s21  }
   0x9   :  { %214 = dma.done.wait [#allocation4], 256  }
   0xa   :  { %215 = vsyncadd [#allocation4], 4294967040 }
   0xb   :  { %216 = dma.done.wait [#allocation7], 512  }
   0xc   :  { %217 = vsyncadd [#allocation7], 4294966784  ;;  %vm51_vm0 = vcmask 254976   ;;  %v224_v0 = vmov 0.0   ;;  %vm56_vm1 = vcmask 261120   ;;  %v87_v1 = vld [vmem:[#allocation6 + $0x18] sm:$0xff] }
   0xd   :  { %52 = vst.msk [vmem:[#allocation2] sm:$0x3] %vm51_vm0, %v224_v0  ;;  %v86_v2 = vld [vmem:[#allocation6 + $0x10] sm:$0xff]  ;;  %107 = vmatpush.msra.mxu0 %v87_v1  ;;  %v85_v4 = vld [vmem:[#allocation6 + $0x8] sm:$0xff]  ;;  %v55_v5 = vld [vmem:[#allocation3 + $0x8] sm:$0xff]  ;;  %vm73_vm2 = vcmask 1041409  }
   0xe   :  { %v54_v3 = vld [vmem:[#allocation3] sm:$0xff]  ;;  %v64_v8 = vsel %vm56_vm1, %v55_v5, 0.0  ;;  %v84_v9 = vld [vmem:[#allocation6] sm:$0xff]  ;;  %v141_v26 = vld [vmem:[%s265_s2] ss:$0 sm:$0xff]  ;;  %s225_s24 = smov [#allocation8]  }
   0xf   :  { %v57_v6 = vsel %vm56_vm1, %v54_v3, 0.0  ;;  %108 = vmatpush.msra.mxu0 %v86_v2  ;;  %v65_v10 = vrot.slane %v64_v8, 4  ;;  %s121_s25 = sshll.u32 %s225_s24, 4  ;;  %s123_s28 = sshll.u32 %s266_s3, 4  ;;  %s122_s25 = int_to_ptr.vmem [resolvable:$true] %s121_s25  ;;  %s124_s28 = int_to_ptr.hbm [resolvable:$true] %s123_s28 }
  0x10   :  { %v58_v7 = vrot.slane %v57_v6, 4 }
  0x11   :  { %109 = vmatpush.msra.mxu0 %v85_v4  ;;  %v66_v12 = vadd.f32 %v65_v10, %v64_v8 }
  0x12   :  { %v59_v11 = vadd.f32 %v58_v7, %v57_v6 }
  0x13   :  { %110 = vmatpush.msra.mxu0 %v84_v9  ;;  %v67_v14 = vrot.slane %v66_v12, 2 }
  0x14   :  { %v60_v13 = vrot.slane %v59_v11, 2  ;;  %v53_v20 = vld [vmem:[#allocation2] sm:$0x3] }
  0x15   :  { %v68_v16 = vadd.f32 %v67_v14, %v66_v12 }
  0x16   :  { %v61_v15 = vadd.f32 %v60_v13, %v59_v11 }
  0x17   :  { %v69_v18 = vrot.slane %v68_v16, 1 }
  0x18   :  { %v62_v17 = vrot.slane %v61_v15, 1 }
  0x19   :  { %v70_v21 = vadd.f32 %v69_v18, %v68_v16 }
  0x1a   :  { %v63_v19 = vadd.f32 %v62_v17, %v61_v15 }
  0x1c   :  { %v74_v22 = vsel %vm73_vm2, %v70_v21, %v63_v19 }
  0x1d   :  { %v76_v23 = vadd.f32 %v74_v22, %v53_v20 }
  0x1f   :  { %78 = vst.msk [vmem:[#allocation2] sm:$0x3] %vm51_vm0, %v76_v23 }
  0x26   :  { %v82_v24 = vld [vmem:[#allocation2] sm:$0x3] }
  0x27   :  { %v83_v25 = vmul.f32 0.125, %v82_v24 }
  0x29   :  { %134 = vmatmul.msk.f32.vlgmr.msra.gmra.mxu0 %vm56_vm1, %v83_v25 }
  0xa6   :  { %v112_v27 = vpop.f32.mrf.mxu0 }
  0xa7   :  { %v113_v28 = vadd.f32 %v141_v26, %v112_v27 }
  0xa9   :  { %115 = vst [vmem:[#allocation8] sm:$0x3] %v113_v28 }
  0xaa   :  { %126 = dma.vmem_to_hbm [thread:$0]  %s122_s25, 32, %s124_s28, [#allocation5]  }
  0xab   :  { %218 = dma.done.wait [#allocation5], 32  }
  0xac   :  { %219 = vsyncadd [#allocation5], 4294967264 }
  0xad   :  { %131 = vsyncpa [#allocation4], 1 }
  0xae   :  { %132 = vsyncpa [#allocation7], 1 }
  0xaf   :  { %133 = vsyncpa [#allocation5], 1 }

</bundles_post_ra>
